<compile_context>
chip_gen: v7x
topology: tpu7x:2x2x1
jax: 0.10.0
libtpu: 0.0.40
codegen_flags: <defaults>
</compile_context>

<pallas_src>
import functools

import jax
import jax.numpy as jnp
from jax.experimental import pallas as pl
from jax.experimental.pallas import tpu as pltpu


def _round_up(x, m):
    return (x + m - 1) // m * m


def _self_output_kernel(x_ref, res_ref, w_ref, b_ref, g_ref, beta_ref, o_ref, *, eps):
    # x_ref:    (tm, H)   tile of hidden_states
    # res_ref:  (tm, H)   tile of input_tensor (residual)
    # w_ref:    (H_out, H_in)  dense weight in PyTorch Linear layout
    # b_ref:    (1, H)    dense bias
    # g_ref:    (1, H)    LayerNorm gamma
    # beta_ref: (1, H)    LayerNorm beta

    # dense: y = x @ W^T  -> contract x's hidden axis with W's input-feature
    # axis. Operands go to the MXU in their native dtype (bf16/f32); the
    # accumulation is f32 via preferred_element_type.
    y = jax.lax.dot_general(
        x_ref[...], w_ref[...],
        dimension_numbers=(((1,), (1,)), ((), ())),
        preferred_element_type=jnp.float32)
    y = y + b_ref[...].astype(jnp.float32)

    # dropout: identity in eval / inference mode (no-op).

    # residual add (f32)
    y = y + res_ref[...].astype(jnp.float32)

    # LayerNorm over the hidden axis, statistics in f32.
    mean = jnp.mean(y, axis=-1, keepdims=True)
    centered = y - mean
    var = jnp.mean(centered * centered, axis=-1, keepdims=True)
    out = centered * jax.lax.rsqrt(var + eps)
    out = out * g_ref[...].astype(jnp.float32) + beta_ref[...].astype(jnp.float32)

    o_ref[...] = out.astype(o_ref.dtype)


def layoutlmv2_self_output(hidden_states, input_tensor, params, *,
                           eps=1e-12, row_tile=None):
    """hidden_states, input_tensor: [B, S, H]. Returns [B, S, H]."""
    B, S, H = hidden_states.shape
    M = B * S

    x2d = hidden_states.reshape(M, H)
    r2d = input_tensor.reshape(M, H)

    w = params["dense_w"]                      # (H_out, H_in): no transpose here
    b = params["dense_b"].reshape(1, H)
    gamma = params["ln_gamma"].reshape(1, H)
    beta = params["ln_beta"].reshape(1, H)

    itemsize = jnp.dtype(hidden_states.dtype).itemsize
    w_itemsize = jnp.dtype(w.dtype).itemsize
    # Sublane packing: 8 rows (f32), 16 (bf16), 32 (8-bit).
    sublane = {4: 8, 2: 16, 1: 32}.get(itemsize, 8)

    vmem_budget = 48 * 1024 * 1024  # conservative: also fits v7x's 64 MiB VMEM

    def _vmem_est(rt):
        streams = 3 * 2 * rt * H * itemsize        # x / res / out, double-buffered
        weight = 2 * H * H * w_itemsize            # W (constant index, 2 buffers)
        small = 2 * 3 * H * w_itemsize             # b / gamma / beta
        work = 4 * rt * H * 4                      # f32 intermediates headroom
        return streams + weight + small + work

    if row_tile is None:
        # Big tiles amortize per-grid-step overhead and fill MXU rows, but keep
        # at least 2 grid steps (v7x has 2 TensorCores sharding the parallel
        # axis) and stay under the VMEM budget.
        row_tile = min(512, _round_up(pl.cdiv(M, 2), sublane))
        row_tile = max(row_tile, sublane)
        while row_tile > sublane and _vmem_est(row_tile) > vmem_budget:
            row_tile = max(sublane, _round_up(row_tile // 2, sublane))
    else:
        row_tile = max(sublane, _round_up(row_tile, sublane))

    grid_m = pl.cdiv(M, row_tile)
    M_pad = grid_m * row_tile
    if M_pad != M:
        pad = M_pad - M
        x2d = jnp.pad(x2d, ((0, pad), (0, 0)))
        r2d = jnp.pad(r2d, ((0, pad), (0, 0)))

    vmem_limit = int(min(vmem_budget,
                         max(32 * 1024 * 1024, _vmem_est(row_tile) + (1 << 20))))

    out2d = pl.pallas_call(
        functools.partial(_self_output_kernel, eps=eps),
        out_shape=jax.ShapeDtypeStruct((M_pad, H), hidden_states.dtype),
        grid_spec=pltpu.PrefetchScalarGridSpec(
            num_scalar_prefetch=0,
            grid=(grid_m,),
            in_specs=[
                pl.BlockSpec((row_tile, H), lambda i: (i, 0)),   # hidden_states tile
                pl.BlockSpec((row_tile, H), lambda i: (i, 0)),   # residual tile
                pl.BlockSpec((H, H), lambda i: (0, 0)),          # W (grid-invariant)
                pl.BlockSpec((1, H), lambda i: (0, 0)),          # bias
                pl.BlockSpec((1, H), lambda i: (0, 0)),          # gamma
                pl.BlockSpec((1, H), lambda i: (0, 0)),          # beta
            ],
            out_specs=pl.BlockSpec((row_tile, H), lambda i: (i, 0)),
        ),
        compiler_params=pltpu.CompilerParams(
            dimension_semantics=("parallel",),
            vmem_limit_bytes=vmem_limit),
    )(x2d, r2d, w, b, gamma, beta)

    if M_pad != M:
        out2d = out2d[:M]
    return out2d.reshape(B, S, H)


def _reference(hidden_states, input_tensor, params, eps=1e-12):
    y = hidden_states @ params["dense_w"].T + params["dense_b"]
    y = y + input_tensor
    mean = jnp.mean(y, axis=-1, keepdims=True)
    var = jnp.mean((y - mean) ** 2, axis=-1, keepdims=True)
    return (y - mean) / jnp.sqrt(var + eps) * params["ln_gamma"] + params["ln_beta"]


if __name__ == "__main__":
    # Small shapes consistent with the module: batch=2, seq=8, hidden=32.
    B, S, H = 2, 8, 32
    eps = 1e-12  # LayoutLMv2 default layer_norm_eps

    key = jax.random.PRNGKey(0)
    k_x, k_r, k_w, k_b = jax.random.split(key, 4)

    hidden_states = jax.random.normal(k_x, (B, S, H), dtype=jnp.float32)
    input_tensor = jax.random.normal(k_r, (B, S, H), dtype=jnp.float32)

    params = {
        "dense_w": jax.random.normal(k_w, (H, H), dtype=jnp.float32) * (1.0 / H ** 0.5),
        "dense_b": jax.random.normal(k_b, (H,), dtype=jnp.float32) * 0.02,
        "ln_gamma": jnp.ones((H,), dtype=jnp.float32),
        "ln_beta": jnp.zeros((H,), dtype=jnp.float32),
    }

    # f32 path (matches PyTorch reference to tight tolerance).
    out = layoutlmv2_self_output(hidden_states, input_tensor, params, eps=eps)
    out = jax.block_until_ready(out)
    ref = _reference(hidden_states, input_tensor, params, eps=eps)
    assert out.shape == (B, S, H)
    assert jnp.allclose(out, ref, atol=1e-5, rtol=1e-5), "f32 mismatch vs reference"

    # bf16 path (mem-bound configuration recommended by the perf review):
    # bf16 operands straight to the MXU, f32 LayerNorm statistics.
    hs_bf = hidden_states.astype(jnp.bfloat16)
    it_bf = input_tensor.astype(jnp.bfloat16)
    params_bf = {k: v.astype(jnp.bfloat16) for k, v in params.items()}
    out_bf = layoutlmv2_self_output(hs_bf, it_bf, params_bf, eps=eps)
    out_bf = jax.block_until_ready(out_bf)
    ref_bf = _reference(hs_bf.astype(jnp.float32), it_bf.astype(jnp.float32),
                        {k: v.astype(jnp.float32) for k, v in params_bf.items()},
                        eps=eps)
    assert jnp.allclose(out_bf.astype(jnp.float32), ref_bf, atol=5e-2, rtol=5e-2), \
        "bf16 mismatch vs reference"

    print("KERNEL_OK")
</pallas_src>

<mosaic_0001>
module attributes {stable_mosaic.version = 11 : i64} {
  func.func @_self_output_kernel(%arg0: i32, %arg1: memref<8x32xf32, #tpu.memory_space<vmem>>, %arg2: memref<8x32xf32, #tpu.memory_space<vmem>>, %arg3: memref<32x32xf32, #tpu.memory_space<vmem>>, %arg4: memref<1x32xf32, #tpu.memory_space<vmem>>, %arg5: memref<1x32xf32, #tpu.memory_space<vmem>>, %arg6: memref<1x32xf32, #tpu.memory_space<vmem>>, %arg7: memref<8x32xf32, #tpu.memory_space<vmem>>) attributes {dimension_semantics = [#tpu.dimension_semantics<parallel>], iteration_bounds = array<i64: 2>, scalar_prefetch = 0 : i64, scratch_operands = 0 : i64, tpu.core_type = #tpu.core_type<tc>, window_params = [{transform_indices = @transform_0, window_bounds = array<i64: 8, 32>}, {transform_indices = @transform_1, window_bounds = array<i64: 8, 32>}, {pipeline_mode = #tpu.pipeline_mode<synchronous>, transform_indices = @transform_2, window_bounds = array<i64: 32, 32>}, {pipeline_mode = #tpu.pipeline_mode<synchronous>, transform_indices = @transform_3, window_bounds = array<i64: 1, 32>}, {pipeline_mode = #tpu.pipeline_mode<synchronous>, transform_indices = @transform_4, window_bounds = array<i64: 1, 32>}, {pipeline_mode = #tpu.pipeline_mode<synchronous>, transform_indices = @transform_5, window_bounds = array<i64: 1, 32>}, {transform_indices = @transform_6, window_bounds = array<i64: 8, 32>}]} {
    %c0 = arith.constant 0 : index
    %c0_0 = arith.constant 0 : index
    %0 = vector.load %arg1[%c0, %c0_0] : memref<8x32xf32, #tpu.memory_space<vmem>>, vector<8x32xf32>
    %c0_1 = arith.constant 0 : index
    %c0_2 = arith.constant 0 : index
    %1 = vector.load %arg3[%c0_1, %c0_2] : memref<32x32xf32, #tpu.memory_space<vmem>>, vector<32x32xf32>
    %cst = arith.constant dense<0.000000e+00> : vector<8x32xf32>
    %2 = tpu.matmul %0, %1, %cst {dimension_numbers = #tpu.dot_dimension_numbers<[1], [1], [0], [0], [0, 0, 1, 0], [], []>} : vector<8x32xf32>, vector<32x32xf32>, vector<8x32xf32> -> vector<8x32xf32>
    %c0_3 = arith.constant 0 : index
    %c0_4 = arith.constant 0 : index
    %3 = vector.load %arg4[%c0_3, %c0_4] : memref<1x32xf32, #tpu.memory_space<vmem>>, vector<1x32xf32>
    %4 = vector.broadcast %3 : vector<1x32xf32> to vector<8x32xf32>
    %5 = arith.addf %2, %4 : vector<8x32xf32>
    %c0_5 = arith.constant 0 : index
    %c0_6 = arith.constant 0 : index
    %6 = vector.load %arg2[%c0_5, %c0_6] : memref<8x32xf32, #tpu.memory_space<vmem>>, vector<8x32xf32>
    %7 = arith.addf %5, %6 : vector<8x32xf32>
    %cst_7 = arith.constant dense<0.000000e+00> : vector<8xf32>
    %8 = vector.multi_reduction <add>, %7, %cst_7 [1] : vector<8x32xf32> to vector<8xf32>
    %9 = vector.shape_cast %8 : vector<8xf32> to vector<8x1xf32>
    %cst_8 = arith.constant 3.200000e+01 : f32
    %10 = vector.broadcast %cst_8 : f32 to vector<8x1xf32>
    %11 = arith.divf %9, %10 : vector<8x1xf32>
    %12 = vector.broadcast %11 : vector<8x1xf32> to vector<8x32xf32>
    %13 = arith.subf %7, %12 : vector<8x32xf32>
    %14 = arith.mulf %13, %13 : vector<8x32xf32>
    %cst_9 = arith.constant dense<0.000000e+00> : vector<8xf32>
    %15 = vector.multi_reduction <add>, %14, %cst_9 [1] : vector<8x32xf32> to vector<8xf32>
    %16 = vector.shape_cast %15 : vector<8xf32> to vector<8x1xf32>
    %cst_10 = arith.constant 3.200000e+01 : f32
    %17 = vector.broadcast %cst_10 : f32 to vector<8x1xf32>
    %18 = arith.divf %16, %17 : vector<8x1xf32>
    %cst_11 = arith.constant 9.99999996E-13 : f32
    %19 = vector.broadcast %cst_11 : f32 to vector<8x1xf32>
    %20 = arith.addf %18, %19 : vector<8x1xf32>
    %21 = math.rsqrt %20 : vector<8x1xf32>
    %22 = vector.broadcast %21 : vector<8x1xf32> to vector<8x32xf32>
    %23 = arith.mulf %13, %22 : vector<8x32xf32>
    %c0_12 = arith.constant 0 : index
    %c0_13 = arith.constant 0 : index
    %24 = vector.load %arg5[%c0_12, %c0_13] : memref<1x32xf32, #tpu.memory_space<vmem>>, vector<1x32xf32>
    %25 = vector.broadcast %24 : vector<1x32xf32> to vector<8x32xf32>
    %26 = arith.mulf %23, %25 : vector<8x32xf32>
    %c0_14 = arith.constant 0 : index
    %c0_15 = arith.constant 0 : index
    %27 = vector.load %arg6[%c0_14, %c0_15] : memref<1x32xf32, #tpu.memory_space<vmem>>, vector<1x32xf32>
    %28 = vector.broadcast %27 : vector<1x32xf32> to vector<8x32xf32>
    %29 = arith.addf %26, %28 : vector<8x32xf32>
    %c0_16 = arith.constant 0 : index
    %c0_17 = arith.constant 0 : index
    %30 = vector.load %arg7[%c0_16, %c0_17] : memref<8x32xf32, #tpu.memory_space<vmem>>, vector<8x32xf32>
    tpu.vector_store %arg7[%c0_16, %c0_17], %29 {strides = array<i32>} : memref<8x32xf32, #tpu.memory_space<vmem>>, vector<8x32xf32>,
    return
  }
  func.func @transform_0(%arg0: i32) -> (i32, i32) {
    %c0_i32 = arith.constant 0 : i32
    %c0_i32_0 = arith.constant 0 : i32
    return %arg0, %c0_i32 : i32, i32
  }
  func.func @transform_1(%arg0: i32) -> (i32, i32) {
    %c0_i32 = arith.constant 0 : i32
    %c0_i32_0 = arith.constant 0 : i32
    return %arg0, %c0_i32 : i32, i32
  }
  func.func @transform_2(%arg0: i32) -> (i32, i32) {
    %c0_i32 = arith.constant 0 : i32
    %c0_i32_0 = arith.constant 0 : i32
    %c0_i32_1 = arith.constant 0 : i32
    return %c0_i32, %c0_i32_0 : i32, i32
  }
  func.func @transform_3(%arg0: i32) -> (i32, i32) {
    %c0_i32 = arith.constant 0 : i32
    %c0_i32_0 = arith.constant 0 : i32
    %c0_i32_1 = arith.constant 0 : i32
    return %c0_i32, %c0_i32_0 : i32, i32
  }
  func.func @transform_4(%arg0: i32) -> (i32, i32) {
    %c0_i32 = arith.constant 0 : i32
    %c0_i32_0 = arith.constant 0 : i32
    %c0_i32_1 = arith.constant 0 : i32
    return %c0_i32, %c0_i32_0 : i32, i32
  }
  func.func @transform_5(%arg0: i32) -> (i32, i32) {
    %c0_i32 = arith.constant 0 : i32
    %c0_i32_0 = arith.constant 0 : i32
    %c0_i32_1 = arith.constant 0 : i32
    return %c0_i32, %c0_i32_0 : i32, i32
  }
  func.func @transform_6(%arg0: i32) -> (i32, i32) {
    %c0_i32 = arith.constant 0 : i32
    %c0_i32_0 = arith.constant 0 : i32
    return %arg0, %c0_i32 : i32, i32
  }
}

</mosaic_0001>

<bundles_post_ra>
// kernel: tpu_custom_call.1
= control target key start
LH: loop header
LB: loop body
LE: loop exit
PB: predicated region body
PF: predicated region fallthrough
CT: control target
= control target key end

     0   :  { %s1141_s0 = inlined_call_operand.hbm [shape: f32[16,32], index: 0, kind: input, shape index: {}]   ;;  %s1142_s1 = inlined_call_operand.hbm [shape: f32[16,32], index: 1, kind: input, shape index: {}]   ;;  %s1143_s2 = inlined_call_operand.hbm [shape: f32[32,32], index: 2, kind: input, shape index: {}]   ;;  %s1144_s3 = inlined_call_operand.vmem [shape: f32[1,32], index: 3, kind: input, shape index: {}]   ;;  %s1145_s4 = inlined_call_operand.vmem [shape: f32[1,32], index: 4, kind: input, shape index: {}]   ;;  %s1146_s5 = inlined_call_operand.vmem [shape: f32[1,32], index: 5, kind: input, shape index: {}]   ;;  %s1147_s6 = inlined_call_operand.hbm [shape: f32[16,32], index: 6, kind: output, shape index: {}]  }
   0x1   :  { %1153 = sst [smem:[#allocation15_spill]] %s1143_s2 }
   0x2   :  { %11 = vsyncpa [#allocation3], 0 }
   0x3   :  { %13 = vsyncpa [#allocation3 + $0x1], 0 }
   0x4   :  { %14 = vsyncpa [#allocation6], 0 }
   0x5   :  { %16 = vsyncpa [#allocation6 + $0x1], 0 }
   0x6   :  { %17 = vsyncpa [#allocation4], 0 }
   0x7   :  { %19 = vsyncpa [#allocation4 + $0x1], 0  ;;  %s891_s21 = smov 0   ;;  %s893_s22 = smov 0  }
   0x8   :  { %s895_s23 = smov 0   ;;  %s897_s24 = smov 0  }
   0x9 LB: > { %1154 = sst [smem:[#allocation13_spill]] %s841_s23  ;;  %s912_s25 = sadd.s32 4294967295, %s845_s24   ;;  %s845_s24 = sphi %s897_s24, %s1176_s24   ;;  %s841_s23 = sphi %s895_s23, %s1175_s23   ;;  %s837_s22 = sphi %s893_s22, %s1174_s22   ;;  %s833_s21 = sphi %s891_s21, %s1173_s21  }
   0xa   : > { %s565_s26 = sadd.s32 4294967294, %s845_s24   ;;  %p45_p0 = scmp.ne.s32.totalorder %s837_s22, %s833_s21 }
   0xb   : > { %p1148_p1 = scmp.eq.s32.totalorder %s912_s25, 0  ;;  %p185_p3 = scmp.eq.s32.totalorder %s565_s26, 1 }
   0xc   : > { %p566_p5 = scmp.ge.s32.totalorder %s845_s24, 1  ;;  %p192_p7 = scmp.lt.s32.totalorder %s845_s24, 3 }
   0xd   : > { %p921_p4 = por %p1148_p1, %p45_p0  ;;  %p926_p6 = por %p185_p3, %p45_p0 }
   0xe   : > { %p931_p8 = pnand %p566_p5, %p192_p7  ;;  %s847_s30 = smov [#allocation7]  }
   0xf   : > { %s1155_s27 = scalar_select %p921_p4, 1, 0 }
  0x10   : > { %s1156_s28 = scalar_select %p926_p6, 1, 0 }
  0x11   : > { %s1157_s29 = scalar_select %p931_p8, 1, 0 }
  0x12   : > { %s204_s7 = sshll.u32 %s847_s30, 4  ;;  %p624_p9 = pneg %p931_p8  ;;  %s935_s7 = int_to_ptr.vmem [resolvable:$true] %s204_s7 }
  0x13   : > { %s947_s9 = sadd.s32 1, %s845_s24   ;;  %s32_s10 = sadd.s32 1, %s841_s23 }
  0x14   : > { %p942_p11 = pnand %p624_p9, %p1148_p1  ;;  %s29_s11 = ssub.s32 %s845_s24, %s947_s9 }
  0x15   : > { %s1159_s2 = sld [smem:[#allocation15_spill]] }
  0x16   : > { %p685_p13 = pneg %p942_p11 }
  0x1b   : > { %s683_s14 = scalar_lea.hbm %s1159_s2, 512 }
  0x1c   : > { %p684_p12 = scmp.ne.s32.totalorder %s1159_s2, %s683_s14  ;;  %p690_p5 = scmp.lt.u32.totalorder %s683_s14, %s1159_s2 }
  0x1e   : > { %p686_p0 = pnand %p685_p13, %p684_p12 }
  0x20   : > { %p687_p3 = pneg %p686_p0 }
  0x22   : > { %p692_p7 = pnand %p690_p5, %p687_p3 }
  0x24   : > { %695 = shalt.err (!%p692_p7)
}
  0x25   : > { %s696_s19 = scalar_lea.vmem %s935_s7, 512  ;;  %p704_p2 = scmp.lt.s32.totalorder %s935_s7, %s935_s7 }
  0x26   : > { %p697_p9 = scmp.ne.s32.totalorder %s935_s7, %s696_s19  ;;  %p705_p6 = scmp.lt.s32.totalorder %s696_s19, %s696_s19 }
  0x28   : > { %p699_p10 = pnand %p697_p9, %p685_p13  ;;  %p706_p4 = por %p705_p6, %p704_p2 }
  0x2a   : > { %p700_p1 = pneg %p699_p10 }
  0x2c   : > { %p707_p8 = pnand %p706_p4, %p700_p1 }
  0x2e   : > { %710 = shalt.err (!%p707_p8)
}
  0x2f   : > { %s848_s20 = smov 128   ;;  %s849_s26 = smov 8  }
  0x30   : > { %627 = dma.hbm_to_vmem [thread:$0]  (!%p942_p11), %s1159_s2, 512, %s935_s7, [#allocation6], %s848_s20, %s848_s20, %s849_s26  }
  0x31   : > { %p30_p2 = scmp.eq.s32.totalorder %s29_s11, 0  ;;  %p39_p1 = scmp.ne.s32.totalorder %s841_s23, %s837_s22 }
  0x32   : > { %p40_p4 = scmp.eq.s32.totalorder %s845_s24, 0  ;;  %p640_p6 = scmp.lt.s32.totalorder %s845_s24, 2 }
  0x33   : > { %s978_s13 = scalar_select %p30_p2, %s841_s23, %s32_s10  }
  0x34   : > { %p41_p8 = por %p40_p4, %p39_p1  ;;  %p1161_p10 = scmp.eq.s32.totalorder %s912_s25, 1 }
  0x35   : > { %1160 = sst [smem:[#allocation14_spill]] %s978_s13  ;;  %s227_s15 = sand.u32 1, %s841_s23  }
  0x36   : > { %p982_p12 = por %p1161_p10, %p39_p1  ;;  %s570_s16 = sshll.u32 %s845_s24, 7 }
  0x37   : > { %s988_s17 = sshll.u32 %s227_s15, 3  ;;  %s993_s7 = scalar_lea.hbm %s1141_s0, %s570_s16 }
  0x38   : > { %s1162_s14 = scalar_select %p982_p12, 1, 0 }
  0x39   : > { %s231_s10 = scalar_lea.vmem [#allocation2], %s988_s17  ;;  %p996_p11 = pnand %p640_p6, %p41_p8 }
  0x3a   : > { %s238_s11 = sshll.u32 %s231_s10, 4  ;;  %s1005_s30 = scalar_lea.hbm %s1142_s1, %s570_s16  ;;  %s1000_s11 = int_to_ptr.vmem [resolvable:$true] %s238_s11 }
  0x3b   : > { %s228_s12 = scalar_lea.sflag [#allocation3], %s227_s15  ;;  %s711_s8 = scalar_lea.hbm %s993_s7, 128 }
  0x3c   : > { %p712_p13 = scmp.ne.s32.totalorder %s993_s7, %s711_s8  ;;  %p713_p0 = pneg %p996_p11 }
  0x3d   : > { %s716_s2 = scalar_lea.hbm %s1141_s0, 256  ;;  %p717_p7 = scmp.lt.u32.totalorder %s993_s7, %s1141_s0 }
  0x3e   : > { %p714_p3 = pnand %p713_p0, %p712_p13  ;;  %p718_p9 = scmp.lt.u32.totalorder %s716_s2, %s711_s8 }
  0x3f   : > { %p720_p1 = scmp.lt.u32.totalorder %s711_s8, %s993_s7 }
  0x40   : > { %p715_p5 = pneg %p714_p3  ;;  %p719_p2 = por %p718_p9, %p717_p7 }
  0x42   : > { %p721_p4 = por %p720_p1, %p719_p2 }
  0x44   : > { %p722_p6 = pnand %p721_p4, %p715_p5 }
  0x46   : > { %725 = shalt.err (!%p722_p6)
}
  0x47   : > { %s726_s15 = scalar_lea.vmem %s1000_s11, 128  ;;  %s850_s16 = smov [#allocation2]  }
  0x48   : > { %p727_p8 = scmp.ne.s32.totalorder %s1000_s11, %s726_s15  ;;  %s731_s20 = sshll.u32 %s850_s16, 4  ;;  %s732_s20 = int_to_ptr.vmem [resolvable:$false] %s731_s20 }
  0x49   : > { %s733_s23 = scalar_lea.vmem %s732_s20, 256  ;;  %p734_p3 = scmp.lt.s32.totalorder %s1000_s11, %s732_s20 }
  0x4a   : > { %p729_p10 = pnand %p727_p8, %p713_p0  ;;  %p735_p7 = scmp.lt.s32.totalorder %s733_s23, %s726_s15 }
  0x4c   : > { %p730_p13 = pneg %p729_p10  ;;  %p736_p9 = por %p735_p7, %p734_p3 }
  0x4e   : > { %p737_p2 = pnand %p736_p9, %p730_p13 }
  0x50   : > { %740 = shalt.err (!%p737_p2)
}
  0x51   : > { %631 = dma.hbm_to_vmem [thread:$0]  (!%p996_p11), %s993_s7, 128, %s1000_s11, %s228_s12  }
  0x52   : > { %s245_s2 = sand.u32 1, %s845_s24   ;;  %s249_s13 = scalar_lea.vmem [#allocation5], %s988_s17 }
  0x53   : > { %s256_s26 = sshll.u32 %s249_s13, 4  ;;  %s246_s8 = scalar_lea.sflag [#allocation6], %s245_s2  ;;  %s257_s26 = int_to_ptr.vmem [resolvable:$true] %s256_s26 }
  0x54   : > { %s741_s18 = scalar_lea.hbm %s1005_s30, 128  ;;  %s746_s16 = scalar_lea.hbm %s1142_s1, 256 }
  0x55   : > { %p742_p5 = scmp.ne.s32.totalorder %s1005_s30, %s741_s18  ;;  %p747_p6 = scmp.lt.u32.totalorder %s1005_s30, %s1142_s1 }
  0x56   : > { %p748_p8 = scmp.lt.u32.totalorder %s746_s16, %s741_s18  ;;  %p750_p13 = scmp.lt.u32.totalorder %s741_s18, %s1005_s30 }
  0x57   : > { %p744_p1 = pnand %p742_p5, %p713_p0 }
  0x58   : > { %p749_p10 = por %p748_p8, %p747_p6 }
  0x59   : > { %p745_p4 = pneg %p744_p1 }
  0x5a   : > { %p751_p3 = por %p750_p13, %p749_p10 }
  0x5c   : > { %p752_p7 = pnand %p751_p3, %p745_p4 }
  0x5e   : > { %755 = shalt.err (!%p752_p7)
}
  0x5f   : > { %s756_s17 = scalar_lea.vmem %s257_s26, 128  ;;  %s851_s7 = smov [#allocation5]  }
  0x60   : > { %p757_p9 = scmp.ne.s32.totalorder %s257_s26, %s756_s17  ;;  %s761_s11 = sshll.u32 %s851_s7, 4  ;;  %s762_s11 = int_to_ptr.vmem [resolvable:$false] %s761_s11 }
  0x61   : > { %s763_s12 = scalar_lea.vmem %s762_s11, 256  ;;  %p764_p1 = scmp.lt.s32.totalorder %s257_s26, %s762_s11 }
  0x62   : > { %p759_p2 = pnand %p757_p9, %p713_p0  ;;  %p765_p12 = scmp.lt.s32.totalorder %s763_s12, %s756_s17 }
  0x64   : > { %p760_p5 = pneg %p759_p2  ;;  %p766_p6 = por %p765_p12, %p764_p1 }
  0x66   : > { %p767_p8 = pnand %p766_p6, %p760_p5 }
  0x68   : > { %770 = shalt.err (!%p767_p8)
}
  0x69   : > { %634 = dma.hbm_to_vmem [thread:$0]  (!%p996_p11), %s1005_s30, 128, %s257_s26, %s246_s8  }
  0x6a   : > { %p1164_p4 = scmp.ne.s32.totalorder %s1157_s29, 0 }
  0x6b   : > { %s1056_s2 = sand.u32 (!%p1164_p4), 1, %s837_s22   ;;  %p1165_p12 = scmp.ne.s32.totalorder (!%p1164_p4), %s1155_s27, 0 }
  0x6c   : > { %265 = sbr.rel (%p1164_p4) target bundleno = 683 (0x2ab), region = 44  ;;  %s1059_s13 = sshll.u32 (!%p1164_p4), %s1056_s2, 3 }
  0x6d   : > { %s268_s18 = scalar_lea.sflag (!%p1164_p4), [#allocation3], %s1056_s2  ;;  %s271_s10 = scalar_lea.vmem (!%p1164_p4), [#allocation2], %s1059_s13 }
  0x73   : > { %816 = dma.done.wait (%p1165_p12), %s268_s18, 128  }
  0x74   : > { %818 = vsyncadd (%p1165_p12), %s268_s18, 4294967168  ;;  %s276_s29 = sand.u32 1, %s912_s25   ;;  %s280_s30 = scalar_lea.vmem [#allocation5], %s1059_s13 }
  0x75   : > { %s277_s19 = scalar_lea.sflag [#allocation6], %s276_s29 }
  0x76   : > { %820 = dma.done.wait (%p1165_p12), %s277_s19, 128  }
  0x77   : > { %822 = vsyncadd (%p1165_p12), %s277_s19, 4294967168  ;;  %p1166_p11 = scmp.eq.s32.totalorder %s912_s25, 0 }
  0x79   : > { %824 = dma.done.wait (%p1166_p11), [#allocation6], 512   ;;  %p1167_p0 = pmov %p1166_p11 }
  0x7a   : > { %v852_v0 = vmov 0.0|0.0   ;;  %vm853_vm0 = vmmov 0   ;;  %v854_v1 = vmov 0.0   ;;  %vm330_vm1 = vcmask 261120   ;;  %v319_v2 = vld [vmem:[#allocation7] sm:$0xff]  ;;  %v320_v3 = vld [vmem:[#allocation7 + $0x8] sm:$0xff] }
  0x7b   : > { %826 = vsyncadd (%p1167_p0), [#allocation6], 4294966784  ;;  %606 = vmatprep.subr.bf16.mxu0 %v852_v0  ;;  %603 = vmatprep.mubr.msk.f32.mxu0 %vm853_vm0, %v854_v1  ;;  %v607_v4 = vpack.c.bf16 %v320_v3, %v319_v2  ;;  %v321_v5 = vld [vmem:[#allocation7 + $0x10] sm:$0xff]  ;;  %v322_v6 = vld [vmem:[#allocation7 + $0x18] sm:$0xff]  ;;  %s587_s23 = sshll.u32 %s912_s25, 7  ;;  %s317_s17 = scalar_lea.vmem [#allocation8], %s1059_s13 }
  0x7c   : > { %vm608_vm2 = vmpackc.low %vm330_vm1, %vm330_vm1  ;;  %v611_v7 = vpack.c.bf16 %v322_v6, %v321_v5  ;;  %v318_v8 = vld [vmem:[%s271_s10] sm:$0xff]  ;;  %v416_v11 = vld [vmem:[%s280_s30] sm:$0xff]  ;;  %s463_s7 = sshll.u32 %s317_s17, 4  ;;  %s1096_s18 = scalar_lea.hbm %s1147_s6, %s587_s23  ;;  %s1098_s7 = int_to_ptr.vmem [resolvable:$true] %s463_s7 }
  0x7d   : > { %609 = vmatpush3.bf16.xpose.msk.msra.mxu0 %vm608_vm2, %v607_v4  ;;  %v578_v9 = vld [vmem:[%s1144_s3] ss:$0 sm:$0xff]  ;;  %s450_s10 = scalar_lea.sflag [#allocation4], %s1056_s2  ;;  %s771_s29 = scalar_lea.vmem %s1098_s7, 128 }
  0x7e   : > { %610 = vmatprep.subr.bf16.mxu0 %v852_v0  ;;  %v584_v25 = vld [vmem:[%s1145_s4] ss:$0 sm:$0xff]  ;;  %p772_p10 = scmp.ne.s32.totalorder %s1098_s7, %s771_s29  ;;  %p1168_p13 = scmp.ne.s32.totalorder %s1162_s14, 0 }
  0x7f   : > { %v585_v27 = vld [vmem:[%s1146_s5] ss:$0 sm:$0xff]  ;;  %s855_s25 = smov [#allocation8]  }
  0x80   : > { %p773_p3 = pnand %p772_p10, %p1168_p13  ;;  %s775_s13 = sshll.u32 %s855_s25, 4  ;;  %s776_s13 = int_to_ptr.vmem [resolvable:$false] %s775_s13 }
  0x81   : > { %s777_s19 = scalar_lea.vmem %s776_s13, 256  ;;  %p778_p9 = scmp.lt.s32.totalorder %s1098_s7, %s776_s13 }
  0x82   : > { %p774_p7 = pneg %p773_p3  ;;  %p779_p2 = scmp.lt.s32.totalorder %s777_s19, %s771_s29 }
  0x84   : > { %p780_p5 = por %p779_p2, %p778_p9 }
  0x85   : > { %613 = vmatpush3.bf16.xpose.msk.msra.mxu0 %vm608_vm2, %v611_v7 }
  0x86   : > { %p781_p1 = pnand %p780_p5, %p774_p7 }
  0x8c   : > { %604 = vmatmul.mubr.msk.f32.vlgmr.msra.gmra.mrb[0].mxu0 %vm330_vm1, %v318_v8 }
 0x15f   : > { %v412_v10 = vpop.f32.mrb[0].mxu0 }
 0x160   : > { %v413_v12 = vadd.f32 %v578_v9, %v412_v10  ;;  %v605_v13 = vpop.f32.mrb[1].mxu0 }
 0x162   : > { %v417_v14 = vadd.f32 %v416_v11, %v413_v12 }
 0x164   : > { %v418_v15 = vsel %vm330_vm1, %v417_v14, 0.0 }
 0x165   : > { %419 = vadd.xlane.f32.xlu0 %v418_v15 }
 0x1f2   : > { %v420_v16 = vpop.xlane.xlu0 %419 }
 0x1f3   : > { %v422_v17 = vmul.f32 0.03125, %v420_v16 }
 0x1f5   : > { %v423_v18 = vsub.f32 %v417_v14, %v422_v17 }
 0x1f7   : > { %v424_v19 = vmul.f32 %v423_v18, %v423_v18 }
 0x1f9   : > { %v425_v20 = vsel %vm330_vm1, %v424_v19, 0.0 }
 0x1fa   : > { %426 = vadd.xlane.f32.xlu0 %v425_v20 }
 0x287   : > { %v427_v21 = vpop.xlane.xlu0 %426 }
 0x288   : > { %v428_v22 = vmul.f32 0.03125, %v427_v21 }
 0x28a   : > { %v429_v23 = vadd.f32 1e-12, %v428_v22 }
 0x28c   : > { %681 = vrsqrt.f32 %v429_v23 }
 0x296   : > { %v682_v24 = vpop.eup %681 }
 0x297   : > { %v431_v26 = vmul.f32 %v682_v24, %v423_v18 }
 0x299   : > { %v439_v28 = vmul.f32 %v584_v25, %v431_v26 }
 0x29b   : > { %v447_v29 = vadd.f32 %v585_v27, %v439_v28 }
 0x29d   : > { %448 = vst.msk [vmem:[%s317_s17] sm:$0xff] %vm330_vm1, %v447_v29 }
 0x29e   : > { %784 = shalt.err (!%p781_p1)
}
 0x29f   : > { %s785_s2 = scalar_lea.hbm %s1096_s18, 128  ;;  %s789_s26 = scalar_lea.hbm %s1147_s6, 256 }
 0x2a0   : > { %p786_p6 = scmp.ne.s32.totalorder %s1096_s18, %s785_s2  ;;  %p790_p12 = scmp.lt.u32.totalorder %s1096_s18, %s1147_s6 }
 0x2a1   : > { %p791_p11 = scmp.lt.u32.totalorder %s789_s26, %s785_s2  ;;  %p793_p10 = scmp.lt.u32.totalorder %s785_s2, %s1096_s18 }
 0x2a2   : > { %p787_p8 = pnand %p786_p6, %p1168_p13 }
 0x2a3   : > { %p792_p0 = por %p791_p11, %p790_p12 }
 0x2a4   : > { %p788_p4 = pneg %p787_p8 }
 0x2a5   : > { %p794_p3 = por %p793_p10, %p792_p0 }
 0x2a7   : > { %p795_p7 = pnand %p794_p3, %p788_p4 }
 0x2a9   : > { %798 = shalt.err (!%p795_p7)
}
 0x2aa   : > { %622 = dma.vmem_to_hbm [thread:$0]  (%p1168_p13), %s1098_s7, 128, %s1096_s18, %s450_s10  }
 0x2ab PF: > { %s475_s16 = sand.u32 1, %s833_s21   ;;  %p1169_p9 = scmp.ne.s32.totalorder %s1156_s28, 0 }
 0x2ac   : > { %p1170_p2 = scmp.ge.s32.totalorder %s845_s24, 2  ;;  %s476_s20 = scalar_lea.sflag [#allocation4], %s475_s16 }
 0x2ae   : > { %p636_p5 = pnand %p1170_p2, %p1169_p9 }
 0x2b0   : > { %828 = dma.done.wait (!%p636_p5), %s476_s20, 128  }
 0x2b1   : > { %830 = vsyncadd (!%p636_p5), %s476_s20, 4294967168  ;;  %s1171_s23 = sld [smem:[#allocation13_spill]]  ;;  %s1172_s17 = sld [smem:[#allocation14_spill]] }
 0x2b2   : > { %p22_p1 = scmp.ge.s32.totalorder %s947_s9, 4   ;;  %s1173_s21 = smov %s837_s22 }
 0x2b3   : > { %s1176_s24 = smov %s947_s9 }
 0x2b4   :  { %24 = sbr.rel (!%p22_p1) target bundleno = 9 (0x9), region = 106 }
 0x2b7   : > { %s1174_s22 = smov %s1171_s23  ;;  %s1175_s23 = smov %s1172_s17 }
 0x2bb   :  { %481 = vsyncpa [#allocation3], 1 }
 0x2bc   :  { %483 = vsyncpa [#allocation3 + $0x1], 1 }
 0x2bd   :  { %484 = vsyncpa [#allocation6], 1 }
 0x2be   :  { %486 = vsyncpa [#allocation6 + $0x1], 1 }
 0x2bf   :  { %487 = vsyncpa [#allocation4], 1 }
 0x2c0   :  { %489 = vsyncpa [#allocation4 + $0x1], 1 }

</bundles_post_ra>
